<compile_context>
chip_gen: v6e
topology: v6e:2x2x1
jax: 0.10.0
libtpu: 0.0.40
codegen_flags: <defaults>
</compile_context>

<pallas_src>
import math

import jax
import jax.numpy as jnp
from jax.experimental import pallas as pl
from jax.experimental.pallas import tpu as pltpu

_LANE = 128
_SUBLANE = 8
# Per-buffer target for the (double-buffered) x tile; keeps total VMEM well
# under the 48 MiB scoped limit requested below (headroom under v7x's 64 MiB).
_X_TILE_TARGET_BYTES = 8 * 1024 * 1024
_VMEM_LIMIT_BYTES = 48 * 1024 * 1024


def _avg_pool_kernel(x_ref, m_ref, out_ref):
    x = x_ref[...]                    # [TB, S, TH]   x.dtype
    m = m_ref[...]                    # [TB, 1, S]    x.dtype, exactly 0/1
    # Masked sum over the sequence axis as a batched MXU contraction,
    # accumulated in float32 regardless of the input dtype.
    x_sum = jnp.einsum(
        "bqs,bsh->bqh", m, x, preferred_element_type=jnp.float32
    )                                 # [TB, 1, TH] f32
    # Valid-token count per row, accumulated exactly in float32.
    denom = jnp.sum(m, axis=-1, dtype=jnp.float32)               # [TB, 1]
    # clamp(count, min=1), then divide via EUP reciprocal + multiply.
    inv = pl.reciprocal(jnp.maximum(denom, 1.0), approx=True)    # [TB, 1]
    out_ref[...] = (x_sum[:, 0, :] * inv).astype(out_ref.dtype)


def _choose_tiles(B, S, H, itemsize):
    """Pick lane/sublane aligned (TB, TH) tiles that fit the VMEM budget."""
    # Feature tile: full H when small, otherwise a lane-dense multiple of 128.
    th = H if H <= 512 else 512
    # Batch tile: full B when small, otherwise a multiple of the sublane count.
    tb = B if B <= _SUBLANE else _SUBLANE
    # Grow the batch tile while the x tile stays comfortably within budget
    # (amortizes the ~0.35us/step grid overhead for large-B / small-S*H cases).
    while tb * 2 <= B and 2 * tb * S * th * itemsize <= _X_TILE_TARGET_BYTES:
        tb *= 2
    # Shrink the feature tile for long sequences (S stays whole per block).
    while th > _LANE and th % _LANE == 0 and tb * S * th * itemsize > _X_TILE_TARGET_BYTES:
        th //= 2
    # NOTE: for extremely long sequences where even (TB, S, 128) overflows VMEM,
    # the next step would be an S grid axis with an f32 VMEM accumulator and
    # pl.when init/finalize; not needed for typical pooling shapes.
    return tb, th


def _sequence_avg_pooler_3d(x, mask_rows):
    B, S, H = x.shape
    tb, th = _choose_tiles(B, S, H, jnp.dtype(x.dtype).itemsize)
    grid = (pl.cdiv(B, tb), pl.cdiv(H, th))
    return pl.pallas_call(
        _avg_pool_kernel,
        out_shape=jax.ShapeDtypeStruct((B, H), x.dtype),
        grid=grid,
        in_specs=[
            pl.BlockSpec((tb, S, th), lambda i, j: (i, 0, j)),
            pl.BlockSpec((tb, 1, S), lambda i, j: (i, 0, 0)),
        ],
        out_specs=pl.BlockSpec((tb, th), lambda i, j: (i, j)),
        compiler_params=pltpu.CompilerParams(
            dimension_semantics=("parallel", "parallel"),
            vmem_limit_bytes=_VMEM_LIMIT_BYTES,
        ),
    )(x, mask_rows)


def sequence_avg_pooler(x, x_mask):
    """Masked mean pooling over the sequence axis (dim=-2).

    x:      [..., S, H] float
    x_mask: [..., S, 1] bool
    returns [..., H]
    """
    *lead, S, H = x.shape
    assert x_mask.shape == (*lead, S, 1), (x.shape, x_mask.shape)
    B = math.prod(lead)

    x3 = x.reshape(B, S, H)
    # Squeeze the mask and put S on the lane axis ([B, 1, S]); 0/1 values are
    # exact in any float dtype, the kernel accumulates sums/counts in float32.
    mask_rows = jnp.swapaxes(x_mask.reshape(B, S, 1), -1, -2).astype(x.dtype)

    out = _sequence_avg_pooler_3d(x3, mask_rows)
    return out.reshape(*lead, H)


def _reference(x, x_mask):
    m = x_mask.astype(jnp.float32)
    x_masked = jnp.where(x_mask, x.astype(jnp.float32), 0.0)
    x_active = jnp.sum(m, axis=-2)
    x_active = jnp.where(x_active == 0, 1.0, x_active)
    return (jnp.sum(x_masked, axis=-2) / x_active).astype(x.dtype)


if __name__ == "__main__":
    key = jax.random.PRNGKey(0)
    B, S, H = 2, 8, 32

    kx, _ = jax.random.split(key)
    x = jax.random.normal(kx, (B, S, H), dtype=jnp.float32)

    # Valid-length style mask: batch 0 keeps 5 tokens, batch 1 keeps all 8.
    lengths = jnp.array([5, 8], dtype=jnp.int32)
    seq_ids = jnp.arange(S, dtype=jnp.int32)[None, :]          # [1, S]
    x_mask = (seq_ids < lengths[:, None])[..., None]           # [B, S, 1] bool

    out = jax.block_until_ready(sequence_avg_pooler(x, x_mask))
    ref = _reference(x, x_mask)
    assert out.shape == (B, H)
    assert jnp.allclose(out, ref, atol=2e-3, rtol=2e-3), "mismatch vs reference"

    # Exercise the clamp path (a fully-masked row divides by 1, not 0).
    lengths0 = jnp.array([3, 0], dtype=jnp.int32)
    x_mask0 = (seq_ids < lengths0[:, None])[..., None]
    out0 = jax.block_until_ready(sequence_avg_pooler(x, x_mask0))
    ref0 = _reference(x, x_mask0)
    assert jnp.allclose(out0, ref0, atol=2e-3, rtol=2e-3), "mismatch (empty mask)"

    print("KERNEL_OK")
</pallas_src>

<mosaic_0001>
module attributes {stable_mosaic.version = 11 : i64} {
  func.func @_avg_pool_kernel(%arg0: i32, %arg1: i32, %arg2: memref<2x8x32xf32, #tpu.memory_space<vmem>>, %arg3: memref<2x1x8xf32, #tpu.memory_space<vmem>>, %arg4: memref<2x32xf32, #tpu.memory_space<vmem>>) attributes {dimension_semantics = [#tpu.dimension_semantics<parallel>, #tpu.dimension_semantics<parallel>], iteration_bounds = array<i64: 1, 1>, scalar_prefetch = 0 : i64, scratch_operands = 0 : i64, tpu.core_type = #tpu.core_type<tc>, window_params = [{transform_indices = @transform_0, window_bounds = array<i64: 2, 8, 32>}, {transform_indices = @transform_1, window_bounds = array<i64: 2, 1, 8>}, {transform_indices = @transform_2, window_bounds = array<i64: 2, 32>}]} {
    %c0 = arith.constant 0 : index
    %c0_0 = arith.constant 0 : index
    %c0_1 = arith.constant 0 : index
    %0 = vector.load %arg2[%c0, %c0_0, %c0_1] : memref<2x8x32xf32, #tpu.memory_space<vmem>>, vector<2x8x32xf32>
    %c0_2 = arith.constant 0 : index
    %c0_3 = arith.constant 0 : index
    %c0_4 = arith.constant 0 : index
    %1 = vector.load %arg3[%c0_2, %c0_3, %c0_4] : memref<2x1x8xf32, #tpu.memory_space<vmem>>, vector<2x1x8xf32>
    "tpu.trace_start"() <{level = 10 : i32, message = "bqs,bsh->bqh"}> : () -> ()
    %cst = arith.constant dense<0.000000e+00> : vector<2x1x32xf32>
    %2 = tpu.matmul %1, %0, %cst {dimension_numbers = #tpu.dot_dimension_numbers<[2], [1], [1], [2], [0, 0, 0, 1, 1, 2], [0], [0]>} : vector<2x1x8xf32>, vector<2x8x32xf32>, vector<2x1x32xf32> -> vector<2x1x32xf32>
    "tpu.trace_stop"() : () -> ()
    %cst_5 = arith.constant dense<0.000000e+00> : vector<2x1xf32>
    %3 = vector.multi_reduction <add>, %1, %cst_5 [2] : vector<2x1x8xf32> to vector<2x1xf32>
    %cst_6 = arith.constant 1.000000e+00 : f32
    %4 = vector.broadcast %cst_6 : f32 to vector<2x1xf32>
    %5 = arith.maximumf %3, %4 : vector<2x1xf32>
    %6 = tpu.reciprocal %5 {approx = true} : vector<2x1xf32> -> vector<2x1xf32>
    %7 = vector.shape_cast %2 : vector<2x1x32xf32> to vector<2x32xf32>
    %8 = vector.broadcast %6 : vector<2x1xf32> to vector<2x32xf32>
    %9 = arith.mulf %7, %8 : vector<2x32xf32>
    %c0_7 = arith.constant 0 : index
    %c0_8 = arith.constant 0 : index
    %10 = vector.load %arg4[%c0_7, %c0_8] : memref<2x32xf32, #tpu.memory_space<vmem>>, vector<2x32xf32>
    tpu.vector_store %arg4[%c0_7, %c0_8], %9 {strides = array<i32>} : memref<2x32xf32, #tpu.memory_space<vmem>>, vector<2x32xf32>,
    return
  }
  func.func @transform_0(%arg0: i32, %arg1: i32) -> (i32, i32, i32) {
    %c0_i32 = arith.constant 0 : i32
    %c0_i32_0 = arith.constant 0 : i32
    return %arg0, %c0_i32, %arg1 : i32, i32, i32
  }
  func.func @transform_1(%arg0: i32, %arg1: i32) -> (i32, i32, i32) {
    %c0_i32 = arith.constant 0 : i32
    %c0_i32_0 = arith.constant 0 : i32
    %c0_i32_1 = arith.constant 0 : i32
    return %arg0, %c0_i32, %c0_i32_0 : i32, i32, i32
  }
  func.func @transform_2(%arg0: i32, %arg1: i32) -> (i32, i32) {
    %c0_i32 = arith.constant 0 : i32
    return %arg0, %arg1 : i32, i32
  }
}

</mosaic_0001>

<bundles_post_ra>
// kernel: tpu_custom_call.1
= control target key start
LH: loop header
LB: loop body
LE: loop exit
PB: predicated region body
PF: predicated region fallthrough
CT: control target
= control target key end

     0   :  { %7 = vsyncpa [#allocation3], 0  ;;  %s364_s0 = inlined_call_operand.hbm [shape: f32[2,8,32], index: 0, kind: input, shape index: {}]   ;;  %s365_s1 = inlined_call_operand.hbm [shape: f32[2,1,8], index: 1, kind: input, shape index: {}]   ;;  %s366_s2 = inlined_call_operand.hbm [shape: f32[2,32], index: 2, kind: output, shape index: {}]  }
   0x1   :  { %8 = vsyncpa [#allocation6], 0 }
   0x2   :  { %9 = vsyncpa [#allocation4], 0  ;;  %s331_s9 = smov [#allocation2]  }
   0x3   :  { %s15_s10 = sshll.u32 %s331_s9, 4  ;;  %s16_s10 = int_to_ptr.vmem [resolvable:$true] %s15_s10 }
   0x4   :  { %s273_s11 = scalar_lea.vmem %s16_s10, 256  ;;  %p278_p1 = scmp.lt.s32.totalorder %s16_s10, %s16_s10 }
   0x5   :  { %p274_p0 = scmp.ne.s32.totalorder %s16_s10, %s273_s11  ;;  %p279_p2 = scmp.lt.s32.totalorder %s273_s11, %s273_s11 }
   0x7   :  { %p280_p3 = por %p279_p2, %p278_p1 }
   0x9   :  { %p281_p4 = pnand %p280_p3, %p274_p0 }
   0xb   :  { %284 = shalt.err (!%p281_p4)
}
   0xc   :  { %s332_s12 = smov 128   ;;  %s333_s13 = smov 8  }
   0xd   :  { %21 = dma.hbm_to_vmem [thread:$0]  %s364_s0, 256, %s16_s10, [#allocation3], %s332_s12, %s332_s12, %s333_s13  }
   0xe   :  { %s334_s16 = smov [#allocation5]  }
   0xf   :  { %s27_s17 = sshll.u32 %s334_s16, 4  ;;  %s28_s17 = int_to_ptr.vmem [resolvable:$true] %s27_s17 }
  0x10   :  { %s293_s18 = scalar_lea.vmem %s28_s17, 32  ;;  %p298_p6 = scmp.lt.s32.totalorder %s28_s17, %s28_s17 }
  0x11   :  { %p294_p5 = scmp.ne.s32.totalorder %s28_s17, %s293_s18  ;;  %p299_p7 = scmp.lt.s32.totalorder %s293_s18, %s293_s18 }
  0x13   :  { %p300_p8 = por %p299_p7, %p298_p6 }
  0x15   :  { %p301_p9 = pnand %p300_p8, %p294_p5 }
  0x17   :  { %304 = shalt.err (!%p301_p9)
}
  0x18   :  { %s335_s19 = smov 16   ;;  %s336_s20 = smov 1  }
  0x19   :  { %33 = dma.hbm_to_vmem [thread:$0]  %s365_s1, 32, %s28_s17, [#allocation6], %s335_s19, %s335_s19, %s336_s20  }
  0x1a   :  { %325 = dma.done.wait [#allocation3], 256  }
  0x1b   :  { %326 = vsyncadd [#allocation3], 4294967040 }
  0x1c   :  { %327 = dma.done.wait [#allocation6], 32  }
  0x1d   :  { %328 = vsyncadd [#allocation6], 4294967264  ;;  %v337_v0 = vmov 0.0   ;;  %vm338_vm0 = vmmov 0   ;;  %vm44_vm1 = vcmask 64512   ;;  %vm191_vm2 = vcmask 57344  }
  0x1e   :  { %242 = vmatprep.subr.mxu0 %v337_v0  ;;  %247 = vmatprep.subr.mxu1 %v337_v0  ;;  %v40_v1 = vld [vmem:[#allocation2] sm:$0xff]  ;;  %v41_v2 = vld [vmem:[#allocation2 + $0x8] sm:$0xff]  ;;  %v42_v3 = vld [vmem:[#allocation5] sm:$0x1]  ;;  %v202_v11 = vlaneseq  ;;  %s339_s0 = smov [#allocation7]   ;;  %vm215_vm3 = vcmask 1041409  }
  0x1f   :  { %244 = vmatprep.mubr.msk.f32.mxu0 %vm338_vm0, %v337_v0  ;;  %249 = vmatprep.mubr.msk.f32.mxu1 %vm338_vm0, %v337_v0  ;;  %v43_v4 = vld [vmem:[#allocation5 + $0x1] sm:$0x1]  ;;  %v192_v6 = vsel %vm191_vm2, %v42_v3, 0.0  ;;  %s226_s1 = sshll.u32 %s339_s0, 4  ;;  %vm218_vm4 = vcmask 254976   ;;  %s227_s1 = int_to_ptr.vmem [resolvable:$true] %s226_s1 }
  0x20   :  { %243 = vmatpush3.msra.mxu0 %v40_v1  ;;  %248 = vmatpush3.msra.mxu1 %v41_v2  ;;  %v195_v5 = vsel %vm191_vm2, %v43_v4, 0.0  ;;  %v203_v12 = vshrl.u32 %v202_v11, 7  ;;  %s305_s23 = scalar_lea.vmem %s227_s1, 32  ;;  %p310_p11 = scmp.lt.s32.totalorder %s227_s1, %s227_s1 }
  0x21   :  { %245 = vmatmul.mubr.msk.f32.vlgmr.msra.gmra.mxu0 %vm44_vm1, %v42_v3  ;;  %250 = vmatmul.mubr.msk.f32.vlgmr.msra.gmra.mxu1 %vm44_vm1, %v43_v4  ;;  %p306_p10 = scmp.ne.s32.totalorder %s227_s1, %s305_s23  ;;  %p311_p12 = scmp.lt.s32.totalorder %s305_s23, %s305_s23 }
  0x22   :  { %196 = vadd.xlane.f32.xlu0 %v195_v5  ;;  %v204_v14 = vsub.s32 0, %v203_v12 }
  0x23   :  { %p312_p13 = por %p311_p12, %p310_p11 }
  0x25   :  { %p313_p0 = pnand %p312_p13, %p306_p10 }
  0x26   :  { %193 = vadd.xlane.f32.xlu0 %v192_v6 }
  0xab   :  { %v197_v7 = vpop.xlane.xlu0 %196 }
  0xac   :  { %v199_v10 = vmax.f32 %v197_v7, 1.0 }
  0xaf   :  { %v194_v8 = vpop.xlane.xlu0 %193 }
  0xb0   :  { %v198_v9 = vmax.f32 %v194_v8, 1.0 }
  0xb2   :  { %261 = vrcp.f32 %v198_v9 }
  0xb3   :  { %263 = vrcp.f32 %v199_v10 }
  0xbf   :  { %v262_v13 = vpop.eup %261 }
  0xc0   :  { %v264_v15 = vpop.eup %263  ;;  %v205_v16 = vrot.slane %v262_v13, %v204_v14 }
  0xc1   :  { %v209_v17 = vrot.slane %v264_v15, %v204_v14 }
  0xe1   :  { %v114_v18 = vpop.f32.mrf.mxu0  ;;  %v187_v19 = vpop.f32.mrf.mxu1 }
  0xe2   :  { %v210_v20 = vmul.f32 %v205_v16, %v114_v18  ;;  %v211_v21 = vmul.f32 %v209_v17, %v187_v19 }
  0xe3   :  { %v246_v22 = vpop.f32.mrf.mxu0  ;;  %v251_v23 = vpop.f32.mrf.mxu1 }
  0xe4   :  { %v214_v24 = vrot.slane %v211_v21, 7 }
  0xe6   :  { %v216_v25 = vsel %vm215_vm3, %v214_v24, %v210_v20 }
  0xe7   :  { %219 = vst.msk [vmem:[#allocation7] sm:$0x3] %vm218_vm4, %v216_v25 }
  0xe8   :  { %316 = shalt.err (!%p313_p0)
}
  0xe9   :  { %229 = dma.vmem_to_hbm [thread:$0]  %s227_s1, 32, %s366_s2, [#allocation4]  }
  0xea   :  { %329 = dma.done.wait [#allocation4], 32  }
  0xeb   :  { %330 = vsyncadd [#allocation4], 4294967264 }
  0xec   :  { %233 = vsyncpa [#allocation3], 1 }
  0xed   :  { %234 = vsyncpa [#allocation6], 1 }
  0xee   :  { %235 = vsyncpa [#allocation4], 1 }

</bundles_post_ra>
